<compile_context>
chip_gen: v6e
topology: v6e:2x2x1
jax: 0.10.0
libtpu: 0.0.40
codegen_flags: <defaults>
</compile_context>

<pallas_src>
import math
import functools

import jax
import jax.numpy as jnp
from jax.experimental import pallas as pl
from jax.experimental.pallas import tpu as pltpu


def _round_up(x, m):
    return ((x + m - 1) // m) * m


def _caan_kernel(r_ref, wqk_ref, bqk_ref, wvp_ref, bvp_ref, beff_ref, o_ref,
                 *, n, bblk, dc):
    # Shapes (all static):
    #   r_ref    : (bblk*n, Dq)      flattened (batch, asset) rows
    #   wqk_ref  : (Dq, 2*Dc)        packed [Wq | Wk]
    #   bqk_ref  : (1, 2*Dc)
    #   wvp_ref  : (1, Dq)           Wv @ (W1 W2) as a row vector
    #   bvp_ref  : (1, 1)            bv @ (W1 W2)
    #   beff_ref : (1, 1)            b1 W2 + b2
    #   o_ref    : (8, bblk*n // 8)  lane-dense flattened scores
    r = r_ref[...]                                                # (rows, Dq)

    # One wide MXU matmul for Q and K projections; stay 2D as long as possible.
    qk = jnp.dot(r, wqk_ref[...],
                 preferred_element_type=jnp.float32) + bqk_ref[...]   # (rows, 2*Dc)
    q = qk[:, :dc].reshape(bblk, n, dc)
    k = qk[:, dc:].reshape(bblk, n, dc)

    # Attention scores exactly as in the torch code (exp / sum, no max-sub).
    gamma = jnp.einsum('bnd,bmd->bnm', q, k,
                       preferred_element_type=jnp.float32) * (1.0 / math.sqrt(dc))
    eg = jnp.exp(gamma)                                           # (bblk, n, n)
    denom = jnp.sum(eg, axis=-1, keepdims=True)                   # (bblk, n, 1)
    r0 = pl.reciprocal(denom, approx=True)                        # EUP slot
    inv = r0 * (2.0 - denom * r0)                                 # 1 Newton step
    attn = eg * inv

    # Folded V/fc head: v'[b,m] = R[b,m,:] @ (Wv W1 W2) + bv W1 W2  (VPU, no MXU).
    vprime = jnp.sum(r * wvp_ref[...], axis=-1, keepdims=True) + bvp_ref[...]  # (rows, 1)
    vp = vprime.reshape(bblk, 1, n)

    # score[b,n] = sum_m attn[b,n,m] * v'[b,m] + b_eff   (broadcast-mul + reduce)
    score = jnp.sum(attn * vp, axis=-1) + beff_ref[...]           # (bblk, n)

    # Lane-dense store: flatten to (8, bblk*n/8).
    o_ref[...] = score.reshape(8, (bblk * n) // 8)


def caan_forward(R, params, block_b=None):
    """R: (B, N, Dq) float32. Returns winner_score: (B, N) float32."""
    B, N, Dq = R.shape
    wq, bq, wk, bk, wv, bv, w1, b1, w2, b2 = params
    Dc = wq.shape[1]

    # Pack Q/K projection weights into one wide matmul operand.
    wqk = jnp.concatenate([wq, wk], axis=1)                       # (Dq, 2*Dc)
    bqk = jnp.concatenate([bq, bk], axis=1)                       # (1, 2*Dc)

    # Collapse fc1/fc2 (both affine) and fold them into the V projection.
    w_eff = w1 @ w2                                               # (Dc, 1)
    wvp = (wv @ w_eff).reshape(1, Dq)                             # (1, Dq)
    bvp = (bv @ w_eff).reshape(1, 1)                              # (1, 1)
    beff = (b1 @ w2 + b2).reshape(1, 1)                           # (1, 1)

    # Batch blocking: ~2048 R rows per grid step, block_b a multiple of 8,
    # and at least 2 grid steps so v7x's two TensorCores both get work.
    if block_b is None:
        target_rows = 2048
        block_b = max(8, _round_up(min(pl.cdiv(target_rows, N),
                                       pl.cdiv(B, 2)), 8))
    block_b = _round_up(int(block_b), 8)
    nblk = max(2, pl.cdiv(B, block_b))        # ideally even; >=2 for TC sharding
    B_pad = nblk * block_b

    if B_pad != B:
        R = jnp.pad(R, ((0, B_pad - B), (0, 0), (0, 0)))
    r2d = R.reshape(B_pad * N, Dq)                                # row-major (batch, asset)

    cols = (block_b * N) // 8
    kernel = functools.partial(_caan_kernel, n=N, bblk=block_b, dc=Dc)

    out = pl.pallas_call(
        kernel,
        out_shape=jax.ShapeDtypeStruct((nblk * 8, cols), jnp.float32),
        grid_spec=pltpu.PrefetchScalarGridSpec(
            num_scalar_prefetch=0,
            grid=(nblk,),
            in_specs=[
                pl.BlockSpec((block_b * N, Dq), lambda i: (i, 0)),   # R slab
                pl.BlockSpec((Dq, 2 * Dc), lambda i: (0, 0)),        # packed [Wq|Wk]
                pl.BlockSpec((1, 2 * Dc), lambda i: (0, 0)),         # packed [bq|bk]
                pl.BlockSpec((1, Dq), lambda i: (0, 0)),             # Wv @ (W1 W2)
                pl.BlockSpec((1, 1), lambda i: (0, 0)),              # bv @ (W1 W2)
                pl.BlockSpec((1, 1), lambda i: (0, 0)),              # b1 W2 + b2
            ],
            out_specs=pl.BlockSpec((8, cols), lambda i: (i, 0)),     # lane-dense rows
        ),
        compiler_params=pltpu.CompilerParams(
            dimension_semantics=("parallel",)),
    )(r2d, wqk, bqk, wvp, bvp, beff)

    # (nblk*8, cols) is the row-major flattening of (B_pad, N).
    return out.reshape(B_pad, N)[:B]


def caan_reference(R, params):
    # Faithful to the PyTorch module (separate fc1/fc2, plain division).
    wq, bq, wk, bk, wv, bv, w1, b1, w2, b2 = params
    q = R @ wq + bq[0]
    k = R @ wk + bk[0]
    v = R @ wv + bv[0]
    dk = q.shape[-1]
    gamma = jnp.einsum("bnd,bmd->bnm", q, k) / math.sqrt(dk)
    eg = jnp.exp(gamma)
    attn = eg / jnp.sum(eg, axis=-1, keepdims=True)
    a = attn @ v
    h = a @ w1 + b1[0]
    s = h @ w2 + b2[0]
    return s[..., 0]


def init_params(key, query_dim, caan_dim):
    """Deterministic synthetic init (shapes match the nn.Module __init__)."""
    ks = jax.random.split(key, 10)
    scale = 0.1
    wq = scale * jax.random.normal(ks[0], (query_dim, caan_dim), jnp.float32)
    bq = scale * jax.random.normal(ks[1], (1, caan_dim), jnp.float32)
    wk = scale * jax.random.normal(ks[2], (query_dim, caan_dim), jnp.float32)
    bk = scale * jax.random.normal(ks[3], (1, caan_dim), jnp.float32)
    wv = scale * jax.random.normal(ks[4], (query_dim, caan_dim), jnp.float32)
    bv = scale * jax.random.normal(ks[5], (1, caan_dim), jnp.float32)
    w1 = scale * jax.random.normal(ks[6], (caan_dim, 30), jnp.float32)
    b1 = scale * jax.random.normal(ks[7], (1, 30), jnp.float32)
    w2 = scale * jax.random.normal(ks[8], (30, 1), jnp.float32)
    b2 = scale * jax.random.normal(ks[9], (1, 1), jnp.float32)
    return (wq, bq, wk, bk, wv, bv, w1, b1, w2, b2)


if __name__ == "__main__":
    # Small config consistent with the module: Query_dim=16, CAAN_dim=32,
    # num_assets (N) = 8, batch = 2.
    B, N, QUERY_DIM, CAAN_DIM = 2, 8, 16, 32

    key = jax.random.PRNGKey(0)
    k_r, k_p = jax.random.split(key)
    R = jax.random.normal(k_r, (B, N, QUERY_DIM), jnp.float32)
    params = init_params(k_p, QUERY_DIM, CAAN_DIM)

    out = jax.block_until_ready(caan_forward(R, params))
    ref = jax.block_until_ready(caan_reference(R, params))

    assert out.shape == (B, N), out.shape
    assert jnp.allclose(out, ref, atol=1e-4, rtol=1e-4), (out, ref)
    print("KERNEL_OK")
</pallas_src>

<mosaic_0001>
module attributes {stable_mosaic.version = 11 : i64} {
  func.func @_caan_kernel(%arg0: i32, %arg1: memref<64x16xf32, #tpu.memory_space<vmem>>, %arg2: memref<16x64xf32, #tpu.memory_space<vmem>>, %arg3: memref<1x64xf32, #tpu.memory_space<vmem>>, %arg4: memref<1x16xf32, #tpu.memory_space<vmem>>, %arg5: memref<1x1xf32, #tpu.memory_space<vmem>>, %arg6: memref<1x1xf32, #tpu.memory_space<vmem>>, %arg7: memref<8x8xf32, #tpu.memory_space<vmem>>) attributes {dimension_semantics = [#tpu.dimension_semantics<parallel>], iteration_bounds = array<i64: 2>, scalar_prefetch = 0 : i64, scratch_operands = 0 : i64, tpu.core_type = #tpu.core_type<tc>, window_params = [{transform_indices = @transform_0, window_bounds = array<i64: 64, 16>}, {pipeline_mode = #tpu.pipeline_mode<synchronous>, transform_indices = @transform_1, window_bounds = array<i64: 16, 64>}, {pipeline_mode = #tpu.pipeline_mode<synchronous>, transform_indices = @transform_2, window_bounds = array<i64: 1, 64>}, {pipeline_mode = #tpu.pipeline_mode<synchronous>, transform_indices = @transform_3, window_bounds = array<i64: 1, 16>}, {pipeline_mode = #tpu.pipeline_mode<synchronous>, transform_indices = @transform_4, window_bounds = array<i64: 1, 1>}, {pipeline_mode = #tpu.pipeline_mode<synchronous>, transform_indices = @transform_5, window_bounds = array<i64: 1, 1>}, {transform_indices = @transform_6, window_bounds = array<i64: 8, 8>}]} {
    %c0 = arith.constant 0 : index
    %c0_0 = arith.constant 0 : index
    %0 = vector.load %arg1[%c0, %c0_0] : memref<64x16xf32, #tpu.memory_space<vmem>>, vector<64x16xf32>
    %c0_1 = arith.constant 0 : index
    %c0_2 = arith.constant 0 : index
    %1 = vector.load %arg2[%c0_1, %c0_2] : memref<16x64xf32, #tpu.memory_space<vmem>>, vector<16x64xf32>
    %cst = arith.constant dense<0.000000e+00> : vector<64x64xf32>
    %2 = tpu.matmul %0, %1, %cst {dimension_numbers = #tpu.dot_dimension_numbers<[1], [0], [0], [1], [0, 0, 1, 1], [], []>} : vector<64x16xf32>, vector<16x64xf32>, vector<64x64xf32> -> vector<64x64xf32>
    %c0_3 = arith.constant 0 : index
    %c0_4 = arith.constant 0 : index
    %3 = vector.load %arg3[%c0_3, %c0_4] : memref<1x64xf32, #tpu.memory_space<vmem>>, vector<1x64xf32>
    %4 = vector.broadcast %3 : vector<1x64xf32> to vector<64x64xf32>
    %5 = arith.addf %2, %4 : vector<64x64xf32>
    %6 = vector.extract_strided_slice %5 {offsets = [0, 0], sizes = [64, 32], strides = [1, 1]} : vector<64x64xf32> to vector<64x32xf32>
    %7 = vector.shape_cast %6 : vector<64x32xf32> to vector<8x8x32xf32>
    %8 = vector.extract_strided_slice %5 {offsets = [0, 32], sizes = [64, 32], strides = [1, 1]} : vector<64x64xf32> to vector<64x32xf32>
    %9 = vector.shape_cast %8 : vector<64x32xf32> to vector<8x8x32xf32>
    "tpu.trace_start"() <{level = 10 : i32, message = "bnd,bmd->bnm"}> : () -> ()
    %cst_5 = arith.constant dense<0.000000e+00> : vector<8x8x8xf32>
    %10 = tpu.matmul %7, %9, %cst_5 {dimension_numbers = #tpu.dot_dimension_numbers<[2], [2], [1], [1], [0, 0, 0, 1, 1, 1], [0], [0]>} : vector<8x8x32xf32>, vector<8x8x32xf32>, vector<8x8x8xf32> -> vector<8x8x8xf32>
    "tpu.trace_stop"() : () -> ()
    %cst_6 = arith.constant 0.176776692 : f32
    %11 = vector.broadcast %cst_6 : f32 to vector<8x8x8xf32>
    %12 = arith.mulf %10, %11 : vector<8x8x8xf32>
    %13 = math.exp %12 : vector<8x8x8xf32>
    %cst_7 = arith.constant dense<0.000000e+00> : vector<8x8xf32>
    %14 = vector.multi_reduction <add>, %13, %cst_7 [2] : vector<8x8x8xf32> to vector<8x8xf32>
    %15 = vector.shape_cast %14 : vector<8x8xf32> to vector<8x8x1xf32>
    %16 = tpu.reciprocal %15 {approx = true} : vector<8x8x1xf32> -> vector<8x8x1xf32>
    %17 = arith.mulf %15, %16 : vector<8x8x1xf32>
    %cst_8 = arith.constant 2.000000e+00 : f32
    %18 = vector.broadcast %cst_8 : f32 to vector<8x8x1xf32>
    %19 = arith.subf %18, %17 : vector<8x8x1xf32>
    %20 = arith.mulf %16, %19 : vector<8x8x1xf32>
    %21 = vector.broadcast %20 : vector<8x8x1xf32> to vector<8x8x8xf32>
    %22 = arith.mulf %13, %21 : vector<8x8x8xf32>
    %c0_9 = arith.constant 0 : index
    %c0_10 = arith.constant 0 : index
    %23 = vector.load %arg4[%c0_9, %c0_10] : memref<1x16xf32, #tpu.memory_space<vmem>>, vector<1x16xf32>
    %24 = vector.broadcast %23 : vector<1x16xf32> to vector<64x16xf32>
    %25 = arith.mulf %0, %24 : vector<64x16xf32>
    %cst_11 = arith.constant dense<0.000000e+00> : vector<64xf32>
    %26 = vector.multi_reduction <add>, %25, %cst_11 [1] : vector<64x16xf32> to vector<64xf32>
    %27 = vector.shape_cast %26 : vector<64xf32> to vector<64x1xf32>
    %c0_12 = arith.constant 0 : index
    %c0_13 = arith.constant 0 : index
    %28 = vector.load %arg5[%c0_12, %c0_13] : memref<1x1xf32, #tpu.memory_space<vmem>>, vector<1x1xf32>
    %29 = vector.broadcast %28 : vector<1x1xf32> to vector<64x1xf32>
    %30 = arith.addf %27, %29 : vector<64x1xf32>
    %31 = vector.shape_cast %30 : vector<64x1xf32> to vector<8x1x8xf32>
    %32 = vector.broadcast %31 : vector<8x1x8xf32> to vector<8x8x8xf32>
    %33 = arith.mulf %22, %32 : vector<8x8x8xf32>
    %cst_14 = arith.constant dense<0.000000e+00> : vector<8x8xf32>
    %34 = vector.multi_reduction <add>, %33, %cst_14 [2] : vector<8x8x8xf32> to vector<8x8xf32>
    %c0_15 = arith.constant 0 : index
    %c0_16 = arith.constant 0 : index
    %35 = vector.load %arg6[%c0_15, %c0_16] : memref<1x1xf32, #tpu.memory_space<vmem>>, vector<1x1xf32>
    %36 = vector.broadcast %35 : vector<1x1xf32> to vector<8x8xf32>
    %37 = arith.addf %34, %36 : vector<8x8xf32>
    %c0_17 = arith.constant 0 : index
    %c0_18 = arith.constant 0 : index
    %38 = vector.load %arg7[%c0_17, %c0_18] : memref<8x8xf32, #tpu.memory_space<vmem>>, vector<8x8xf32>
    tpu.vector_store %arg7[%c0_17, %c0_18], %37 {strides = array<i32>} : memref<8x8xf32, #tpu.memory_space<vmem>>, vector<8x8xf32>,
    return
  }
  func.func @transform_0(%arg0: i32) -> (i32, i32) {
    %c0_i32 = arith.constant 0 : i32
    %c0_i32_0 = arith.constant 0 : i32
    return %arg0, %c0_i32 : i32, i32
  }
  func.func @transform_1(%arg0: i32) -> (i32, i32) {
    %c0_i32 = arith.constant 0 : i32
    %c0_i32_0 = arith.constant 0 : i32
    %c0_i32_1 = arith.constant 0 : i32
    return %c0_i32, %c0_i32_0 : i32, i32
  }
  func.func @transform_2(%arg0: i32) -> (i32, i32) {
    %c0_i32 = arith.constant 0 : i32
    %c0_i32_0 = arith.constant 0 : i32
    %c0_i32_1 = arith.constant 0 : i32
    return %c0_i32, %c0_i32_0 : i32, i32
  }
  func.func @transform_3(%arg0: i32) -> (i32, i32) {
    %c0_i32 = arith.constant 0 : i32
    %c0_i32_0 = arith.constant 0 : i32
    %c0_i32_1 = arith.constant 0 : i32
    return %c0_i32, %c0_i32_0 : i32, i32
  }
  func.func @transform_4(%arg0: i32) -> (i32, i32) {
    %c0_i32 = arith.constant 0 : i32
    %c0_i32_0 = arith.constant 0 : i32
    %c0_i32_1 = arith.constant 0 : i32
    return %c0_i32, %c0_i32_0 : i32, i32
  }
  func.func @transform_5(%arg0: i32) -> (i32, i32) {
    %c0_i32 = arith.constant 0 : i32
    %c0_i32_0 = arith.constant 0 : i32
    %c0_i32_1 = arith.constant 0 : i32
    return %c0_i32, %c0_i32_0 : i32, i32
  }
  func.func @transform_6(%arg0: i32) -> (i32, i32) {
    %c0_i32 = arith.constant 0 : i32
    %c0_i32_0 = arith.constant 0 : i32
    return %arg0, %c0_i32 : i32, i32
  }
}

</mosaic_0001>

<bundles_post_ra>
// kernel: tpu_custom_call.1
= control target key start
LH: loop header
LB: loop body
LE: loop exit
PB: predicated region body
PF: predicated region fallthrough
CT: control target
= control target key end

     0   :  { %s1663_s25 = smov 0   ;;  %s1846_s0 = inlined_call_operand.vmem [shape: f32[128,16], index: 0, kind: input, shape index: {}]   ;;  %s1847_s1 = inlined_call_operand.vmem [shape: f32[16,64], index: 1, kind: input, shape index: {}]   ;;  %s1848_s2 = inlined_call_operand.vmem [shape: f32[1,64], index: 2, kind: input, shape index: {}]   ;;  %s1849_s3 = inlined_call_operand.vmem [shape: f32[1,16], index: 3, kind: input, shape index: {}]   ;;  %s1850_s4 = inlined_call_operand.<no memory space> [shape: f32[1,1], index: 4, kind: input, shape index: {}]   ;;  %s1851_s6 = inlined_call_operand.vmem [shape: f32[16,8], index: 6, kind: output, shape index: {}]   ;;  %s1852_s5 = inlined_call_operand.<no memory space> [shape: f32[1,1], index: 5, kind: input, shape index: {}]  }
   0x1   :  { %v11_v0 = vstv %s1850_s4  ;;  %v13_v1 = vstv %s1852_s5 }
   0x2   :  { %12 = vst [vmem:[#allocation2] sm:$0x1] %v11_v0  ;;  %14 = vst [vmem:[#allocation3] sm:$0x1] %v13_v1 }
   0x3 LB: > { %s1669_s26 = sadd.s32 4294967295, %s1616_s25   ;;  %p1448_p0 = scmp.ge.s32.totalorder %s1616_s25, 1  ;;  %s1616_s25 = sphi %s1663_s25, %s20_s25  }
   0x4   : > { %p217_p1 = scmp.lt.s32.totalorder %s1616_s25, 3 }
   0x6   : > { %p218_p2 = pnand %p1448_p0, %p217_p1 }
   0x7   : > { %s1449_s29 = sshll.u32 (!%p218_p2), %s1669_s26, 3  ;;  %s1620_s12 = smov (!%p218_p2), 96  }
   0x8   : > { %221 = sbr.rel (%p218_p2) target bundleno = 878 (0x36e), region = 44  ;;  %p247_p3 = scmp.lt.s32.totalorder (!%p218_p2), %s1449_s29, 15 }
   0x9   : > { %p252_p4 = scmp.lt.s32.totalorder (!%p218_p2), %s1669_s26, 1 }
   0xd   : > { %v265_v2 = vld [vmem:[%s1847_s1 + $0x8] sm:$0xff]  ;;  %v264_v3 = vld [vmem:[%s1847_s1] sm:$0xff]  ;;  %s1854_s29 = smov (!%p247_p3, %s1449_s29), 15  ;;  %vm273_vm0 = vcmask 130048   ;;  %v1618_v12 = vmov 0.0   ;;  %vm1619_vm1 = vmmov 0  }
   0xe   : > { %1508 = vmatprep.subr.mxu0 %v265_v2  ;;  %s1450_s30 = sshll.u32 %s1854_s29, 3  ;;  %1524 = vmatprep.subr.mxu1 %v1618_v12  ;;  %v1452_v14 = vld [vmem:[%s1848_s2] ss:$0 sm:$0xff]  ;;  %v1621_v45 = vmov 0   ;;  %vm406_vm2 = vcmask 261120   ;;  %vm1044_vm3 = vcmask 64512  }
   0xf   : > { %1509 = vmatpush3.msra.mxu0 %v265_v2  ;;  %s250_s9 = scalar_lea.vmem %s1846_s0, %s1450_s30  ;;  %1526 = vmatprep.mubr.msk.f32.mxu1 %vm1619_vm1, %v1618_v12  ;;  %v1477_v30 = vld [vmem:[%s1849_s3] ss:$0 sm:$0xff]  ;;  %s1856_s26 = smov (!%p252_p4, %s1669_s26), 1  ;;  %vm1229_vm4 = vcmask 1041409   ;;  %vm1230_vm5 = vcmask 1042434   ;;  %vm1232_vm6 = vcmask 1043459  }
  0x10   : > { %1510 = vmatprep.subr.mxu0 %v264_v3  ;;  %v256_v4 = vld [vmem:[%s250_s9] sm:$0xff]  ;;  %v257_v5 = vld [vmem:[%s250_s9 + $0x8] sm:$0xff]  ;;  %v258_v6 = vld [vmem:[%s250_s9 + $0x10] sm:$0xff]  ;;  %1576 = vset.pattern.permute.xlu1 %v1621_v45  ;;  %vm1234_vm7 = vcmask 1044484   ;;  %s1451_s15 = sshll.u32 %s1856_s26, 3  ;;  %vm1236_vm8 = vcmask 1045509  }
  0x11   : > { %1511 = vmatpush3.msra.mxu0 %v264_v3  ;;  %1512 = vmatprep.mubr.msk.f32.mxu0 %vm273_vm0, %v256_v4  ;;  %v259_v7 = vld [vmem:[%s250_s9 + $0x18] sm:$0xff]  ;;  %v260_v8 = vld [vmem:[%s250_s9 + $0x20] sm:$0xff]  ;;  %v261_v9 = vld [vmem:[%s250_s9 + $0x28] sm:$0xff]  ;;  %v1116_v31 = vmul.f32 %v1477_v30, %v256_v4  ;;  %v1118_v33 = vmul.f32 %v1477_v30, %v258_v6  ;;  %v1117_v36 = vmul.f32 %v1477_v30, %v257_v5  ;;  %vm1238_vm9 = vcmask 1046534   ;;  %s255_s18 = scalar_lea.vmem %s1851_s6, %s1451_s15 }
  0x12   : > { %1513 = vmatmul.mubr.msk.f32.vlgmr.msra.gmra.mxu0 %vm273_vm0, %v257_v5  ;;  %v262_v10 = vld [vmem:[%s250_s9 + $0x30] sm:$0xff]  ;;  %v263_v11 = vld [vmem:[%s250_s9 + $0x38] sm:$0xff]  ;;  %1544 = vmatprep.subr.mxu0 %v1618_v12  ;;  %v1119_v35 = vmul.f32 %v1477_v30, %v259_v7  ;;  %v1121_v38 = vmul.f32 %v1477_v30, %v261_v9  ;;  %v1120_v40 = vmul.f32 %v1477_v30, %v260_v8  ;;  %v1761_v56 = vld [vmem:[#allocation2] ss:$0 sm:$0xff]  ;;  %vm1240_vm10 = vcmask 1047559  }
  0x13   : > { %1515 = vmatprep.mubr.msk.f32.mxu0 %vm273_vm0, %v258_v6  ;;  %v1124_v32 = vsel %vm273_vm0, %v1116_v31, 0.0  ;;  %v1130_v34 = vsel %vm273_vm0, %v1118_v33, 0.0  ;;  %v1127_v39 = vsel %vm273_vm0, %v1117_v36, 0.0  ;;  %v1123_v42 = vmul.f32 %v1477_v30, %v263_v11  ;;  %1577 = vset.pattern.permute.xlu0 %v1621_v45 }
  0x14   : > { %v1133_v37 = vsel %vm273_vm0, %v1119_v35, 0.0  ;;  %v1139_v41 = vsel %vm273_vm0, %v1121_v38, 0.0  ;;  %v1136_v43 = vsel %vm273_vm0, %v1120_v40, 0.0  ;;  %v1122_v44 = vmul.f32 %v1477_v30, %v262_v10 }
  0x15   : > { %v1145_v46 = vsel %vm273_vm0, %v1123_v42, 0.0 }
  0x16   : > { %1516 = vmatmul.mubr.msk.f32.gmra.mxu0 %vm273_vm0, %v259_v7  ;;  %v1142_v47 = vsel %vm273_vm0, %v1122_v44, 0.0 }
  0x17   : > { %1518 = vmatprep.mubr.msk.f32.mxu0 %vm273_vm0, %v260_v8 }
  0x1a   : > { %1519 = vmatmul.mubr.msk.f32.gmra.mxu0 %vm273_vm0, %v261_v9 }
  0x1b   : > { %1521 = vmatprep.mubr.msk.f32.mxu0 %vm273_vm0, %v262_v10 }
  0x1e   : > { %1522 = vmatmul.mubr.msk.f32.gmra.mxu0 %vm273_vm0, %v263_v11 }
  0x1f   : > { %1546 = vmatprep.mubr.msk.f32.mxu0 %vm1619_vm1, %v1618_v12 }
  0xd2   : > { %v1514_v13 = vpop.f32.mrf.mxu0 }
  0xd3   : > { %v370_v19 = vadd.f32 %v1514_v13, %v1452_v14 }
  0xd4   : > { %v364_v15 = vpop.f32.mrf.mxu0 }
  0xd5   : > { %v365_v16 = vadd.f32 %v1452_v14, %v364_v15 }
  0xd6   : > { %v1517_v17 = vpop.f32.mrf.mxu0 }
  0xd7   : > { %404 = vrot.lane.b32.xlu0 %v365_v16, %s1620_s12  ;;  %v1703_v23 = vadd.f32 %v1517_v17, %v1452_v14 }
  0xd8   : > { %v374_v18 = vpop.f32.mrf.mxu0 }
  0xd9   : > { %v1700_v20 = vadd.f32 %v1452_v14, %v374_v18 }
  0xda   : > { %v1520_v21 = vpop.f32.mrf.mxu0 }
  0xdb   : > { %559 = vrot.lane.b32.xlu1 %v1700_v20, %s1620_s12  ;;  %482 = vrot.lane.b32.xlu0 %v370_v19, %s1620_s12  ;;  %v1706_v27 = vadd.f32 %v1520_v21, %v1452_v14 }
  0xdc   : > { %v384_v22 = vpop.f32.mrf.mxu0 }
  0xdd   : > { %v385_v24 = vadd.f32 %v1452_v14, %v384_v22 }
  0xde   : > { %v1523_v25 = vpop.f32.mrf.mxu0 }
  0xdf   : > { %636 = vrot.lane.b32.xlu1 %v1703_v23, %s1620_s12  ;;  %713 = vrot.lane.b32.xlu0 %v385_v24, %s1620_s12  ;;  %v1709_v29 = vadd.f32 %v1523_v25, %v1452_v14 }
  0xe0   : > { %v394_v26 = vpop.f32.mrf.mxu0 }
  0xe1   : > { %v395_v28 = vadd.f32 %v1452_v14, %v394_v26 }
  0xe3   : > { %790 = vrot.lane.b32.xlu1 %v1706_v27, %s1620_s12  ;;  %867 = vrot.lane.b32.xlu0 %v395_v28, %s1620_s12 }
  0xe7   : > { %944 = vrot.lane.b32.xlu1 %v1709_v29, %s1620_s12 }
 0x102   : > { %1125 = vadd.xlane.f32.xlu0 %v1124_v32 }
 0x106   : > { %1131 = vadd.xlane.f32.xlu0 %v1130_v34 }
 0x10a   : > { %1134 = vadd.xlane.f32.xlu0 %v1133_v37 }
 0x10b   : > { %1128 = vadd.xlane.f32.xlu1 %v1127_v39 }
 0x10e   : > { %1140 = vadd.xlane.f32.xlu0 %v1139_v41 }
 0x10f   : > { %1137 = vadd.xlane.f32.xlu1 %v1136_v43 }
 0x112   : > { %1146 = vadd.xlane.f32.xlu0 %v1145_v46 }
 0x113   : > { %1143 = vadd.xlane.f32.xlu1 %v1142_v47 }
 0x149   : > { %v405_v48 = vpop.permute.xlu0 %404 }
 0x14a   : > { %1525 = vmatpush3.xpose.msk.msra.mxu1 %vm406_vm2, %v405_v48 }
 0x14b   : > { %1529 = vmatprep.subr.mxu1 %v1618_v12 }
 0x14d   : > { %v560_v49 = vpop.permute.xlu1 %559  ;;  %1527 = vmatmul.mubr.msk.f32.vlgmr.msra.gmra.mxu1 %vm406_vm2, %v365_v16  ;;  %v483_v50 = vpop.permute.xlu0 %482 }
 0x14e   : > { %1530 = vmatpush3.xpose.msk.msra.mxu1 %vm406_vm2, %v483_v50  ;;  %1531 = vmatprep.mubr.msk.f32.mxu1 %vm1619_vm1, %v1618_v12 }
 0x14f   : > { %1534 = vmatprep.subr.mxu1 %v1618_v12 }
 0x151   : > { %v637_v51 = vpop.permute.xlu1 %636  ;;  %1532 = vmatmul.mubr.msk.f32.vlgmr.msra.gmra.mxu1 %vm406_vm2, %v370_v19  ;;  %v714_v52 = vpop.permute.xlu0 %713 }
 0x152   : > { %1535 = vmatpush3.xpose.msk.msra.mxu1 %vm406_vm2, %v560_v49  ;;  %1545 = vmatpush3.xpose.msk.msra.mxu0 %vm406_vm2, %v714_v52 }
 0x153   : > { %1536 = vmatprep.mubr.msk.f32.mxu1 %vm1619_vm1, %v1618_v12  ;;  %1539 = vmatprep.subr.mxu1 %v1618_v12 }
 0x154   : > { %1554 = vmatprep.subr.mxu0 %v1618_v12 }
 0x155   : > { %1537 = vmatmul.mubr.msk.f32.vlgmr.msra.gmra.mxu1 %vm406_vm2, %v1700_v20  ;;  %1547 = vmatmul.mubr.msk.f32.vlgmr.msra.gmra.mxu0 %vm406_vm2, %v385_v24  ;;  %v868_v53 = vpop.permute.xlu0 %867  ;;  %v791_v54 = vpop.permute.xlu1 %790 }
 0x156   : > { %1540 = vmatpush3.xpose.msk.msra.mxu1 %vm406_vm2, %v637_v51  ;;  %1555 = vmatpush3.xpose.msk.msra.mxu0 %vm406_vm2, %v868_v53 }
 0x157   : > { %1541 = vmatprep.mubr.msk.f32.mxu1 %vm1619_vm1, %v1618_v12  ;;  %1556 = vmatprep.mubr.msk.f32.mxu0 %vm1619_vm1, %v1618_v12 }
 0x158   : > { %1549 = vmatprep.subr.mxu1 %v1618_v12 }
 0x159   : > { %1542 = vmatmul.mubr.msk.f32.vlgmr.msra.gmra.mxu1 %vm406_vm2, %v1703_v23  ;;  %1557 = vmatmul.mubr.msk.f32.vlgmr.msra.gmra.mxu0 %vm406_vm2, %v395_v28  ;;  %v945_v55 = vpop.permute.xlu1 %944 }
 0x15a   : > { %1550 = vmatpush3.xpose.msk.msra.mxu1 %vm406_vm2, %v791_v54  ;;  %1551 = vmatprep.mubr.msk.f32.mxu1 %vm1619_vm1, %v1618_v12 }
 0x15b   : > { %1559 = vmatprep.subr.mxu1 %v1618_v12 }
 0x15d   : > { %1552 = vmatmul.mubr.msk.f32.vlgmr.msra.gmra.mxu1 %vm406_vm2, %v1706_v27 }
 0x15e   : > { %1560 = vmatpush3.xpose.msk.msra.mxu1 %vm406_vm2, %v945_v55  ;;  %1561 = vmatprep.mubr.msk.f32.mxu1 %vm1619_vm1, %v1618_v12 }
 0x161   : > { %1562 = vmatmul.mubr.msk.f32.vlgmr.msra.gmra.mxu1 %vm406_vm2, %v1709_v29 }
 0x18b   : > { %v1126_v57 = vpop.xlane.xlu0 %1125 }
 0x18c   : > { %v1155_v58 = vadd.f32 %v1761_v56, %v1126_v57 }
 0x18e   : > { %1172 = vperm.xlu1 %1576, %v1155_v58  }
 0x18f   : > { %v1132_v43 = vpop.xlane.xlu0 %1131 }
 0x190   : > { %v1157_v45 = vadd.f32 %v1761_v56, %v1132_v43 }
 0x193   : > { %v1135_v46 = vpop.xlane.xlu0 %1134 }
 0x194   : > { %v1129_v44 = vpop.xlane.xlu1 %1128  ;;  %v1158_v47 = vadd.f32 %v1761_v56, %v1135_v46 }
 0x195   : > { %v1156_v51 = vadd.f32 %v1761_v56, %v1129_v44 }
 0x197   : > { %v1141_v50 = vpop.xlane.xlu0 %1140 }
 0x198   : > { %v1138_v48 = vpop.xlane.xlu1 %1137  ;;  %v1160_v52 = vadd.f32 %v1761_v56, %v1141_v50 }
 0x199   : > { %v1159_v49 = vadd.f32 %v1761_v56, %v1138_v48 }
 0x19b   : > { %v1147_v55 = vpop.xlane.xlu0 %1146 }
 0x19c   : > { %v1144_v53 = vpop.xlane.xlu1 %1143  ;;  %v1162_v57 = vadd.f32 %v1761_v56, %v1147_v55 }
 0x19d   : > { %v1161_v54 = vadd.f32 %v1761_v56, %v1144_v53 }
 0x209   : > { %v1173_v58 = vpop.permute.xlu1 %1172 }
 0x20d   : > { %v477_v59 = vpop.f32.mrf.mxu1 }
 0x20e   : > { %v1020_v60 = vmul.f32 0.17677669, %v477_v59 }
 0x20f   : > { %v1528_v61 = vpop.f32.mrf.mxu1 }
 0x210   : > { %v1028_v62 = vmul.f32 1.442695, %v1020_v60 }
 0x211   : > { %v554_v63 = vpop.f32.mrf.mxu1 }
 0x212   : > { %1578 = vpow2.f32 %v1028_v62  ;;  %v1021_v0 = vmul.f32 0.17677669, %v554_v63  ;;  %v1195_v62 = vlaneseq }
 0x213   : > { %v1533_v1 = vpop.f32.mrf.mxu1 }
 0x214   : > { %v1030_v2 = vmul.f32 1.442695, %v1021_v0  ;;  %v1196_v1 = vand.u32 127, %v1195_v62 }
 0x215   : > { %v631_v3 = vpop.f32.mrf.mxu1  ;;  %v785_v4 = vpop.f32.mrf.mxu0 }
 0x216   : > { %1580 = vpow2.f32 %v1030_v2  ;;  %v1022_v5 = vmul.f32 0.17677669, %v631_v3  ;;  %v1024_v6 = vmul.f32 0.17677669, %v785_v4  ;;  %v1198_v2 = vshrl.u32 %v1195_v62, 7 }
 0x217   : > { %v1538_v7 = vpop.f32.mrf.mxu1  ;;  %v1548_v8 = vpop.f32.mrf.mxu0 }
 0x218   : > { %v1032_v9 = vmul.f32 1.442695, %v1022_v5  ;;  %v1036_v10 = vmul.f32 1.442695, %v1024_v6  ;;  %v1803_v56 = vsub.s32 %v1196_v1, %v1198_v2 }
 0x219   : > { %v708_v11 = vpop.f32.mrf.mxu1  ;;  %v939_v12 = vpop.f32.mrf.mxu0 }
 0x21a   : > { %1582 = vpow2.f32 %v1032_v9  ;;  %v1023_v13 = vmul.f32 0.17677669, %v708_v11  ;;  %v1026_v14 = vmul.f32 0.17677669, %v939_v12 }
 0x21b   : > { %v1543_v15 = vpop.f32.mrf.mxu1  ;;  %v1558_v16 = vpop.f32.mrf.mxu0  ;;  %1584 = vpow2.f32 %v1036_v10 }
 0x21c   : > { %v1034_v17 = vmul.f32 1.442695, %v1023_v13  ;;  %v1040_v18 = vmul.f32 1.442695, %v1026_v14  ;;  %v1200_v13 = vrot.slane %v1173_v58, %v1803_v56 }
 0x21d   : > { %v862_v19 = vpop.f32.mrf.mxu1 }
 0x21e   : > { %1586 = vpow2.f32 %v1034_v17  ;;  %v1025_v20 = vmul.f32 0.17677669, %v862_v19 }
 0x21f   : > { %v1764_v21 = vpop.eup %1578  ;;  %v1553_v22 = vpop.f32.mrf.mxu1  ;;  %1588 = vpow2.f32 %v1040_v18 }
 0x220   : > { %v1038_v23 = vmul.f32 1.442695, %v1025_v20  ;;  %v1045_v24 = vsel %vm1044_vm3, %v1764_v21, 0.0 }
 0x221   : > { %v1016_v25 = vpop.f32.mrf.mxu1  ;;  %1046 = vadd.xlane.f32.xlu1 %v1045_v24 }
 0x222   : > { %1590 = vpow2.f32 %v1038_v23  ;;  %v1027_v26 = vmul.f32 0.17677669, %v1016_v25 }
 0x223   : > { %v1768_v27 = vpop.eup %1580  ;;  %v1563_v28 = vpop.f32.mrf.mxu1 }
 0x224   : > { %v1042_v29 = vmul.f32 1.442695, %v1027_v26  ;;  %v1048_v30 = vsel %vm1044_vm3, %v1768_v27, 0.0 }
 0x225   : > { %1049 = vadd.xlane.f32.xlu0 %v1048_v30 }
 0x226   : > { %1592 = vpow2.f32 %v1042_v29 }
 0x227   : > { %v1772_v31 = vpop.eup %1582 }
 0x228   : > { %v1051_v32 = vsel %vm1044_vm3, %v1772_v31, 0.0  ;;  %v1776_v33 = vpop.eup %1584 }
 0x229   : > { %1052 = vadd.xlane.f32.xlu1 %v1051_v32  ;;  %v1057_v36 = vsel %vm1044_vm3, %v1776_v33, 0.0 }
 0x22b   : > { %v1778_v34 = vpop.eup %1586 }
 0x22c   : > { %v1054_v35 = vsel %vm1044_vm3, %v1778_v34, 0.0  ;;  %v1784_v37 = vpop.eup %1588 }
 0x22d   : > { %1055 = vadd.xlane.f32.xlu0 %v1054_v35  ;;  %1058 = vadd.xlane.f32.xlu1 %v1057_v36  ;;  %v1063_v40 = vsel %vm1044_vm3, %v1784_v37, 0.0 }
 0x22f   : > { %v1786_v38 = vpop.eup %1590 }
 0x230   : > { %v1060_v39 = vsel %vm1044_vm3, %v1786_v38, 0.0 }
 0x231   : > { %1061 = vadd.xlane.f32.xlu0 %v1060_v39  ;;  %1064 = vadd.xlane.f32.xlu1 %v1063_v40 }
 0x233   : > { %v1792_v41 = vpop.eup %1592 }
 0x234   : > { %v1066_v42 = vsel %vm1044_vm3, %v1792_v41, 0.0 }
 0x235   : > { %1067 = vadd.xlane.f32.xlu0 %v1066_v42 }
 0x242   : > { %1178 = vperm.xlu1 %1576, %v1157_v45  }
 0x246   : > { %1181 = vperm.xlu1 %1576, %v1158_v47  }
 0x24a   : > { %1184 = vperm.xlu1 %1576, %v1159_v49  }
 0x24b   : > { %1175 = vperm.xlu0 %1577, %v1156_v51  }
 0x24e   : > { %1187 = vperm.xlu1 %1576, %v1160_v52  }
 0x252   : > { %1190 = vperm.xlu1 %1576, %v1161_v54  }
 0x256   : > { %1193 = vperm.xlu1 %1576, %v1162_v57  }
 0x2aa   : > { %v1047_v59 = vpop.xlane.xlu1 %1046 }
 0x2ab   : > { %1594 = vrcp.f32 %v1047_v59 }
 0x2ae   : > { %v1050_v60 = vpop.xlane.xlu0 %1049 }
 0x2af   : > { %1596 = vrcp.f32 %v1050_v60 }
 0x2b2   : > { %v1053_v61 = vpop.xlane.xlu1 %1052 }
 0x2b3   : > { %1598 = vrcp.f32 %v1053_v61 }
 0x2b6   : > { %v1059_v63 = vpop.xlane.xlu1 %1058  ;;  %v1056_v0 = vpop.xlane.xlu0 %1055 }
 0x2b7   : > { %1600 = vrcp.f32 %v1059_v63 }
 0x2b8   : > { %v1595_v3 = vpop.eup %1594  ;;  %1602 = vrcp.f32 %v1056_v0 }
 0x2b9   : > { %v1077_v4 = vmul.f32 %v1595_v3, %v1047_v59 }
 0x2ba   : > { %v1065_v5 = vpop.xlane.xlu1 %1064  ;;  %v1062_v6 = vpop.xlane.xlu0 %1061 }
 0x2bb   : > { %v1085_v7 = vsub.f32 2.0, %v1077_v4  ;;  %1604 = vrcp.f32 %v1065_v5 }
 0x2bc   : > { %v1597_v8 = vpop.eup %1596  ;;  %1606 = vrcp.f32 %v1062_v6 }
 0x2bd   : > { %v1093_v9 = vmul.f32 %v1595_v3, %v1085_v7  ;;  %v1078_v10 = vmul.f32 %v1597_v8, %v1050_v60 }
 0x2be   : > { %v1179_v11 = vpop.permute.xlu1 %1178  ;;  %v1068_v12 = vpop.xlane.xlu0 %1067 }
 0x2bf   : > { %v1086_v14 = vsub.f32 2.0, %v1078_v10  ;;  %1608 = vrcp.f32 %v1068_v12  ;;  %v1101_v15 = vmul.f32 %v1764_v21, %v1093_v9  ;;  %v1208_v30 = vrot.slane %v1179_v11, %v1803_v56 }
 0x2c0   : > { %v1599_v16 = vpop.eup %1598 }
 0x2c1   : > { %v1079_v17 = vmul.f32 %v1599_v16, %v1053_v61  ;;  %v1292_v18 = vmul.f32 %v1200_v13, %v1101_v15  ;;  %v1094_v20 = vmul.f32 %v1597_v8, %v1086_v14  ;;  %v1479_v15 = vld [vmem:[#allocation3] ss:$0 sm:$0xff] }
 0x2c2   : > { %v1182_v19 = vpop.permute.xlu1 %1181 }
 0x2c3   : > { %v1087_v22 = vsub.f32 2.0, %v1079_v17  ;;  %v1300_v23 = vsel %vm1044_vm3, %v1292_v18, 0.0  ;;  %v1102_v40 = vmul.f32 %v1768_v27, %v1094_v20  ;;  %v1212_v53 = vrot.slane %v1182_v19, %v1803_v56 }
 0x2c4   : > { %v1601_v24 = vpop.eup %1600  ;;  %1301 = vadd.xlane.f32.xlu1 %v1300_v23 }
 0x2c5   : > { %v1603_v25 = vpop.eup %1602  ;;  %v1095_v26 = vmul.f32 %v1599_v16, %v1087_v22  ;;  %v1081_v28 = vmul.f32 %v1601_v24, %v1059_v63 }
 0x2c6   : > { %v1080_v29 = vmul.f32 %v1603_v25, %v1056_v0  ;;  %v1185_v32 = vpop.permute.xlu1 %1184  ;;  %v1176_v35 = vpop.permute.xlu0 %1175 }
 0x2c7   : > { %v1089_v36 = vsub.f32 2.0, %v1081_v28  ;;  %v1204_v21 = vrot.slane %v1176_v35, %v1803_v56  ;;  %v1103_v39 = vmul.f32 %v1772_v31, %v1095_v26  ;;  %v1216_v27 = vrot.slane %v1185_v32, %v1803_v56 }
 0x2c8   : > { %v1605_v42 = vpop.eup %1604  ;;  %v1088_v43 = vsub.f32 2.0, %v1080_v29 }
 0x2c9   : > { %v1607_v44 = vpop.eup %1606  ;;  %v1097_v45 = vmul.f32 %v1601_v24, %v1089_v36  ;;  %v1083_v46 = vmul.f32 %v1605_v42, %v1065_v5  ;;  %v1294_v47 = vmul.f32 %v1208_v30, %v1103_v39  ;;  %v1293_v48 = vmul.f32 %v1204_v21, %v1102_v40 }
 0x2ca   : > { %v1096_v49 = vmul.f32 %v1603_v25, %v1088_v43  ;;  %v1082_v50 = vmul.f32 %v1607_v44, %v1062_v6  ;;  %v1188_v51 = vpop.permute.xlu1 %1187 }
 0x2cb   : > { %v1091_v52 = vsub.f32 2.0, %v1083_v46  ;;  %v1306_v54 = vsel %vm1044_vm3, %v1294_v47, 0.0  ;;  %v1303_v55 = vsel %vm1044_vm3, %v1293_v48, 0.0  ;;  %v1105_v58 = vmul.f32 %v1776_v33, %v1097_v45 }
 0x2cc   : > { %v1609_v31 = vpop.eup %1608  ;;  %v1090_v57 = vsub.f32 2.0, %v1082_v50  ;;  %1307 = vadd.xlane.f32.xlu1 %v1306_v54  ;;  %1304 = vadd.xlane.f32.xlu0 %v1303_v55  ;;  %v1104_v59 = vmul.f32 %v1778_v34, %v1096_v49  ;;  %v1220_v5 = vrot.slane %v1188_v51, %v1803_v56 }
 0x2cd   : > { %v1099_v60 = vmul.f32 %v1605_v42, %v1091_v52  ;;  %v1084_v61 = vmul.f32 %v1609_v31, %v1068_v12  ;;  %v1296_v0 = vmul.f32 %v1216_v27, %v1105_v58 }
 0x2ce   : > { %v1098_v62 = vmul.f32 %v1607_v44, %v1090_v57  ;;  %v1191_v63 = vpop.permute.xlu1 %1190  ;;  %v1295_v1 = vmul.f32 %v1212_v53, %v1104_v59 }
 0x2cf   : > { %v1092_v2 = vsub.f32 2.0, %v1084_v61  ;;  %v1224_v3 = vrot.slane %v1191_v63, %v1803_v56  ;;  %v1107_v4 = vmul.f32 %v1784_v37, %v1099_v60  ;;  %v1312_v6 = vsel %vm1044_vm3, %v1296_v0, 0.0 }
 0x2d0   : > { %v1309_v7 = vsel %vm1044_vm3, %v1295_v1, 0.0  ;;  %v1106_v33 = vmul.f32 %v1786_v38, %v1098_v62  ;;  %1313 = vadd.xlane.f32.xlu1 %v1312_v6 }
 0x2d1   : > { %v1100_v34 = vmul.f32 %v1609_v31, %v1092_v2  ;;  %1310 = vadd.xlane.f32.xlu0 %v1309_v7  ;;  %v1298_v8 = vmul.f32 %v1224_v3, %v1107_v4 }
 0x2d2   : > { %v1194_v9 = vpop.permute.xlu1 %1193  ;;  %v1297_v10 = vmul.f32 %v1220_v5, %v1106_v33 }
 0x2d3   : > { %v1228_v11 = vrot.slane %v1194_v9, %v1803_v56  ;;  %v1318_v12 = vsel %vm1044_vm3, %v1298_v8, 0.0  ;;  %v1108_v37 = vmul.f32 %v1792_v41, %v1100_v34 }
 0x2d4   : > { %v1315_v13 = vsel %vm1044_vm3, %v1297_v10, 0.0  ;;  %1319 = vadd.xlane.f32.xlu1 %v1318_v12 }
 0x2d5   : > { %1316 = vadd.xlane.f32.xlu0 %v1315_v13  ;;  %v1299_v14 = vmul.f32 %v1228_v11, %v1108_v37 }
 0x2d7   : > { %v1321_v38 = vsel %vm1044_vm3, %v1299_v14, 0.0 }
 0x2d9   : > { %1322 = vadd.xlane.f32.xlu0 %v1321_v38 }
 0x2e5   : > { %1331 = vperm.xlu1 %1576, %v1479_v15  }
 0x34d   : > { %v1302_v16 = vpop.xlane.xlu1 %1301 }
 0x355   : > { %v1308_v17 = vpop.xlane.xlu1 %1307  ;;  %v1305_v18 = vpop.xlane.xlu0 %1304 }
 0x359   : > { %v1314_v19 = vpop.xlane.xlu1 %1313 }
 0x35a   : > { %v1311_v20 = vpop.xlane.xlu0 %1310 }
 0x35d   : > { %v1320_v22 = vpop.xlane.xlu1 %1319 }
 0x35e   : > { %v1317_v23 = vpop.xlane.xlu0 %1316 }
 0x361   : > { %v1332_v41 = vpop.permute.xlu1 %1331 }
 0x362   : > { %v1334_v24 = vadd.f32 %v1332_v41, %v1302_v16  ;;  %v1335_v25 = vadd.f32 %v1332_v41, %v1305_v18  ;;  %v1336_v26 = vadd.f32 %v1332_v41, %v1308_v17  ;;  %v1337_v28 = vadd.f32 %v1332_v41, %v1311_v20  ;;  %v1323_v30 = vpop.xlane.xlu0 %1322 }
 0x363   : > { %v1338_v29 = vadd.f32 %v1332_v41, %v1314_v19  ;;  %v1339_v32 = vadd.f32 %v1332_v41, %v1317_v23  ;;  %v1340_v39 = vadd.f32 %v1332_v41, %v1320_v22  ;;  %v1341_v43 = vadd.f32 %v1332_v41, %v1323_v30 }
 0x364   : > { %v1353_v35 = vrot.slane %v1334_v24, %v1803_v56  ;;  %v1357_v36 = vrot.slane %v1335_v25, %v1803_v56  ;;  %v1361_v21 = vrot.slane %v1336_v26, %v1803_v56  ;;  %v1365_v40 = vrot.slane %v1337_v28, %v1803_v56 }
 0x365   : > { %v1369_v44 = vrot.slane %v1338_v29, %v1803_v56  ;;  %v1373_v46 = vrot.slane %v1339_v32, %v1803_v56  ;;  %v1377_v48 = vrot.slane %v1340_v39, %v1803_v56  ;;  %v1381_v51 = vrot.slane %v1341_v43, %v1803_v56 }
 0x366   : > { %v1382_v42 = vsel %vm1229_vm4, %v1357_v36, %v1353_v35 }
 0x367   : > { %v1383_v45 = vsel %vm1230_vm5, %v1361_v21, %v1382_v42 }
 0x368   : > { %v1384_v47 = vsel %vm1232_vm6, %v1365_v40, %v1383_v45 }
 0x369   : > { %v1385_v49 = vsel %vm1234_vm7, %v1369_v44, %v1384_v47 }
 0x36a   : > { %v1386_v50 = vsel %vm1236_vm8, %v1373_v46, %v1385_v49 }
 0x36b   : > { %v1387_v52 = vsel %vm1238_vm9, %v1377_v48, %v1386_v50 }
 0x36c   : > { %v1388_v53 = vsel %vm1240_vm10, %v1381_v51, %v1387_v52 }
 0x36d   : > { %1390 = vst.msk [vmem:[%s255_s18] sm:$0xff] %vm1044_vm3, %v1388_v53 }
 0x36e PF: > { %s20_s25 = sadd.s32 1, %s1616_s25  }
 0x36f   : > { %p17_p5 = scmp.ge.s32.totalorder %s20_s25, 4  }
 0x371   :  { %19 = sbr.rel (!%p17_p5) target bundleno = 3 (0x3), region = 74 }

</bundles_post_ra>
